<compile_context>
chip_gen: v7x
topology: tpu7x:2x2x1
jax: 0.10.0
libtpu: 0.0.40
codegen_flags: <defaults>
</compile_context>

<pallas_src>
import functools

import jax
import jax.numpy as jnp
from jax.experimental import pallas as pl
from jax.experimental.pallas import tpu as pltpu


def _images_per_step(N):
    """Images per grid step: amortize per-step overhead while keeping >= 2
    'parallel' grid steps whenever possible (v7x has 2 TensorCores)."""
    if N <= 2:
        return 1
    for nb in range(N // 2, 0, -1):
        if N % nb == 0 and N // nb >= 2:
            return nb
    return 1


def _relu_conv_bn_pallas(x_merged, rhs, shift_row, *, H, W, C_in, C_out,
                         ksize, stride, padding, dilation):
    """Fused ReLU -> conv -> folded-BN, contraction on the MXU.

    x_merged:  (N, Hp, Wp*C_in)        zero-padded NHWC input, W/C lane-merged
    rhs:       (k, Wp*C_in, Wo*C_out)  block-Toeplitz BN-folded conv weights
    shift_row: (1, Wo*C_out)           BN shift tiled across output width
    returns    (N, Ho, Wo*C_out)       lane-dense output
    """
    N = x_merged.shape[0]
    k = ksize
    keff = (k - 1) * dilation + 1
    Hp, Wp = H + 2 * padding, W + 2 * padding
    Ho = (Hp - keff) // stride + 1
    Wo = (Wp - keff) // stride + 1
    WC = Wp * C_in
    OC = Wo * C_out

    NB = _images_per_step(N)

    # Output-row tile size (bounds the live vreg set); whole image when small.
    TR = Ho
    if stride == 1 and Ho > 32:
        for cand in (32, 16, 8):
            if Ho % cand == 0:
                TR = cand
                break
    n_row_tiles = Ho // TR if stride == 1 else 1

    def kernel(x_ref, rhs_ref, sh_ref, o_ref):
        # Grid-invariant operands: one dense load per tap matrix + the shift,
        # hoisted out of the image / row-tile loops.
        rhs_k = [rhs_ref[t] for t in range(k)]      # k x (Wp*C_in, Wo*C_out)
        shift = sh_ref[...]                         # (1, Wo*C_out)

        for nb in range(NB):
            if stride == 1:
                def row_tile(rt, carry):
                    r0 = pl.multiple_of(rt * TR, TR)
                    acc = jnp.zeros((TR, OC), jnp.float32)
                    for kh in range(k):
                        band = x_ref[nb, pl.ds(r0 + kh * dilation, TR), :]
                        # ReLU fused here (padding zeros are ReLU-invariant);
                        # contraction over width x input channels on the MXU.
                        acc = acc + jnp.dot(jnp.maximum(band, 0.0), rhs_k[kh],
                                            preferred_element_type=jnp.float32)
                    # BN shift added once per tile; store is full-lane (unmasked).
                    o_ref[nb, pl.ds(r0, TR)] = (acc + shift).astype(o_ref.dtype)
                    return carry

                jax.lax.fori_loop(0, n_row_tiles, row_tile, 0, unroll=True)
            else:
                # TODO(synk): stride>1 / dilation>1 vertical path is not exercised
                # by the demo; the strided row subsample below goes through the XLU
                # and should get its own correctness test before production use.
                acc = jnp.zeros((Ho, OC), jnp.float32)
                for kh in range(k):
                    band = x_ref[nb, pl.ds(kh * dilation, (Ho - 1) * stride + 1), :]
                    lhs = jnp.maximum(band[::stride, :], 0.0)
                    acc = acc + jnp.dot(lhs, rhs_k[kh],
                                        preferred_element_type=jnp.float32)
                o_ref[nb] = (acc + shift).astype(o_ref.dtype)

    return pl.pallas_call(
        kernel,
        out_shape=jax.ShapeDtypeStruct((N, Ho, OC), x_merged.dtype),
        grid=(N // NB,),
        in_specs=[
            pl.BlockSpec((NB, Hp, WC), lambda b: (b, 0, 0)),
            pl.BlockSpec((k, WC, OC), lambda b: (0, 0, 0)),
            pl.BlockSpec((1, OC), lambda b: (0, 0)),
        ],
        out_specs=pl.BlockSpec((NB, Ho, OC), lambda b: (b, 0, 0)),
        compiler_params=pltpu.CompilerParams(
            dimension_semantics=("parallel",),
            vmem_limit_bytes=32 * 1024 * 1024),
    )(x_merged, rhs, shift_row)


@functools.partial(jax.jit, static_argnames=("stride", "padding", "dilation"))
def relu_conv_bn(x_nchw, params, *, stride, padding, dilation):
    """ReLUConvBN forward.  Input/output: NCHW float32 (PyTorch convention)."""
    w = params["w"]                                        # (C_out, C_in, k, k) OIHW
    eps = 1e-5
    scale = params["gamma"] * jax.lax.rsqrt(params["running_var"] + eps)
    shift = params["beta"] - params["running_mean"] * scale
    C_out, C_in, k, _ = w.shape
    N, _, H, W = x_nchw.shape
    keff = (k - 1) * dilation + 1
    Hp, Wp = H + 2 * padding, W + 2 * padding
    Ho = (Hp - keff) // stride + 1
    Wo = (Wp - keff) // stride + 1

    # Fold BN scale into the conv weights; lay out as (kh, kw, ci, co).
    w_s = jnp.transpose(w, (2, 3, 1, 0)) * scale

    # Block-Toeplitz expansion of the width x channel contraction:
    #   rhs[kh, wp*C_in + ci, w*C_out + co] = w_s[kh, kw, ci, co]
    #     where wp = w*stride + kw*dilation   (zero elsewhere)
    # so each row tile becomes k dense MXU matmuls that directly emit the
    # lane-dense (rows, Wo*C_out) output slab.
    wp_i = jnp.arange(Wp)
    wo_i = jnp.arange(Wo)
    kw_i = jnp.arange(k)
    tap_mask = (wp_i[None, :, None] ==
                (wo_i[None, None, :] * stride + kw_i[:, None, None] * dilation)
                ).astype(w_s.dtype)                                    # (k, Wp, Wo)
    rhs = jnp.einsum("hkic,kpw->hpiwc", w_s, tap_mask)
    rhs = rhs.reshape(k, Wp * C_in, Wo * C_out)

    shift_row = jnp.tile(shift, (Wo,)).reshape(1, Wo * C_out)

    # NCHW -> NHWC, zero-pad H/W, lane-merge (W, C) -> W*C.  XLA fuses the pad and
    # reshape into the transpose copy it must perform anyway, so the kernel needs
    # no padded scratch and no halo zero-fill.
    x = jnp.transpose(x_nchw, (0, 2, 3, 1))
    if padding > 0:
        x = jnp.pad(x, ((0, 0), (padding, padding), (padding, padding), (0, 0)))
    x = x.reshape(N, Hp, Wp * C_in)

    y = _relu_conv_bn_pallas(x, rhs, shift_row, H=H, W=W, C_in=C_in, C_out=C_out,
                             ksize=k, stride=stride, padding=padding,
                             dilation=dilation)
    # (N, Ho, Wo*C_out) lane-dense -> NHWC -> NCHW.
    y = y.reshape(N, Ho, Wo, C_out)
    return jnp.transpose(y, (0, 3, 1, 2))


def relu_conv_bn_ref(x_nchw, params, *, stride, padding, dilation):
    """Pure-JAX reference (correctness check only)."""
    eps = 1e-5
    x = jnp.maximum(x_nchw, 0.0)
    y = jax.lax.conv_general_dilated(
        x, params["w"],
        window_strides=(stride, stride),
        padding=[(padding, padding), (padding, padding)],
        rhs_dilation=(dilation, dilation),
        dimension_numbers=("NCHW", "OIHW", "NCHW"))
    scale = params["gamma"] * jax.lax.rsqrt(params["running_var"] + eps)
    shift = params["beta"] - params["running_mean"] * scale
    return y * scale.reshape(1, -1, 1, 1) + shift.reshape(1, -1, 1, 1)


def make_relu_conv_bn_params(key, C_in, C_out, kernel_size, affine=True):
    """Deterministic parameter init (shapes follow the PyTorch module __init__)."""
    kw, kg, kb, km, kv = jax.random.split(key, 5)
    w = 0.1 * jax.random.normal(kw, (C_out, C_in, kernel_size, kernel_size), jnp.float32)
    if affine:
        gamma = 1.0 + 0.1 * jax.random.normal(kg, (C_out,), jnp.float32)
        beta = 0.1 * jax.random.normal(kb, (C_out,), jnp.float32)
    else:
        gamma = jnp.ones((C_out,), jnp.float32)
        beta = jnp.zeros((C_out,), jnp.float32)
    running_mean = 0.1 * jax.random.normal(km, (C_out,), jnp.float32)
    running_var = jax.random.uniform(kv, (C_out,), jnp.float32, 0.5, 1.5)
    return dict(w=w, gamma=gamma, beta=beta,
                running_mean=running_mean, running_var=running_var)


if __name__ == "__main__":
    # ReLUConvBN(C_in=4, C_out=8, kernel_size=3, stride=1, padding=1, dilation=1, affine=True)
    C_in, C_out, kernel_size, stride, padding, dilation = 4, 8, 3, 1, 1, 1
    N, H, W = 2, 16, 16

    key = jax.random.PRNGKey(0)
    k_x, k_p = jax.random.split(key)
    x = jax.random.normal(k_x, (N, C_in, H, W), jnp.float32)   # NCHW, like PyTorch
    params = make_relu_conv_bn_params(k_p, C_in, C_out, kernel_size, affine=True)

    out = relu_conv_bn(x, params, stride=stride, padding=padding, dilation=dilation)
    out = jax.block_until_ready(out)

    ref = relu_conv_bn_ref(x, params, stride=stride, padding=padding, dilation=dilation)
    assert out.shape == (N, C_out, H, W), out.shape
    assert jnp.allclose(out, ref, rtol=1e-4, atol=1e-4), "mismatch vs reference"

    print("KERNEL_OK")
</pallas_src>

<mosaic_0001>
module attributes {stable_mosaic.version = 11 : i64} {
  func.func @kernel(%arg0: i32, %arg1: memref<1x18x72xf32, #tpu.memory_space<vmem>>, %arg2: memref<3x72x128xf32, #tpu.memory_space<vmem>>, %arg3: memref<1x128xf32, #tpu.memory_space<vmem>>, %arg4: memref<1x16x128xf32, #tpu.memory_space<vmem>>) attributes {dimension_semantics = [#tpu.dimension_semantics<parallel>], iteration_bounds = array<i64: 2>, scalar_prefetch = 0 : i64, scratch_operands = 0 : i64, tpu.core_type = #tpu.core_type<tc>, window_params = [{transform_indices = @transform_0, window_bounds = array<i64: 1, 18, 72>}, {pipeline_mode = #tpu.pipeline_mode<synchronous>, transform_indices = @transform_1, window_bounds = array<i64: 3, 72, 128>}, {pipeline_mode = #tpu.pipeline_mode<synchronous>, transform_indices = @transform_2, window_bounds = array<i64: 1, 128>}, {transform_indices = @transform_3, window_bounds = array<i64: 1, 16, 128>}]} {
    %c0 = arith.constant 0 : index
    %c0_0 = arith.constant 0 : index
    %c0_1 = arith.constant 0 : index
    %0 = vector.load %arg2[%c0, %c0_0, %c0_1] : memref<3x72x128xf32, #tpu.memory_space<vmem>>, vector<1x72x128xf32>
    %1 = vector.shape_cast %0 : vector<1x72x128xf32> to vector<72x128xf32>
    %c1 = arith.constant 1 : index
    %c0_2 = arith.constant 0 : index
    %c0_3 = arith.constant 0 : index
    %2 = vector.load %arg2[%c1, %c0_2, %c0_3] : memref<3x72x128xf32, #tpu.memory_space<vmem>>, vector<1x72x128xf32>
    %3 = vector.shape_cast %2 : vector<1x72x128xf32> to vector<72x128xf32>
    %c2 = arith.constant 2 : index
    %c0_4 = arith.constant 0 : index
    %c0_5 = arith.constant 0 : index
    %4 = vector.load %arg2[%c2, %c0_4, %c0_5] : memref<3x72x128xf32, #tpu.memory_space<vmem>>, vector<1x72x128xf32>
    %5 = vector.shape_cast %4 : vector<1x72x128xf32> to vector<72x128xf32>
    %c0_6 = arith.constant 0 : index
    %c0_7 = arith.constant 0 : index
    %6 = vector.load %arg3[%c0_6, %c0_7] : memref<1x128xf32, #tpu.memory_space<vmem>>, vector<1x128xf32>
    %c0_i32 = arith.constant 0 : i32
    %c16_i32 = arith.constant 16 : i32
    %7 = arith.muli %c0_i32, %c16_i32 : i32
    %8 = tpu.assume_multiple %7, 16 : i32
    %cst = arith.constant 0.000000e+00 : f32
    %9 = vector.broadcast %cst : f32 to vector<16x128xf32>
    %c0_i32_8 = arith.constant 0 : i32
    %10 = arith.addi %8, %c0_i32_8 : i32
    %c0_9 = arith.constant 0 : index
    %11 = arith.index_cast %10 : i32 to index
    %c0_10 = arith.constant 0 : index
    %12 = vector.load %arg1[%c0_9, %11, %c0_10] : memref<1x18x72xf32, #tpu.memory_space<vmem>>, vector<1x16x72xf32>
    %13 = vector.shape_cast %12 : vector<1x16x72xf32> to vector<16x72xf32>
    %cst_11 = arith.constant 0.000000e+00 : f32
    %14 = vector.broadcast %cst_11 : f32 to vector<16x72xf32>
    %15 = arith.maximumf %13, %14 : vector<16x72xf32>
    %cst_12 = arith.constant dense<0.000000e+00> : vector<16x128xf32>
    %16 = tpu.matmul %15, %1, %cst_12 {dimension_numbers = #tpu.dot_dimension_numbers<[1], [0], [0], [1], [0, 0, 1, 1], [], []>} : vector<16x72xf32>, vector<72x128xf32>, vector<16x128xf32> -> vector<16x128xf32>
    %17 = arith.addf %9, %16 : vector<16x128xf32>
    %c1_i32 = arith.constant 1 : i32
    %18 = arith.addi %8, %c1_i32 : i32
    %c0_13 = arith.constant 0 : index
    %19 = arith.index_cast %18 : i32 to index
    %c0_14 = arith.constant 0 : index
    %20 = vector.load %arg1[%c0_13, %19, %c0_14] : memref<1x18x72xf32, #tpu.memory_space<vmem>>, vector<1x16x72xf32>
    %21 = vector.shape_cast %20 : vector<1x16x72xf32> to vector<16x72xf32>
    %cst_15 = arith.constant 0.000000e+00 : f32
    %22 = vector.broadcast %cst_15 : f32 to vector<16x72xf32>
    %23 = arith.maximumf %21, %22 : vector<16x72xf32>
    %cst_16 = arith.constant dense<0.000000e+00> : vector<16x128xf32>
    %24 = tpu.matmul %23, %3, %cst_16 {dimension_numbers = #tpu.dot_dimension_numbers<[1], [0], [0], [1], [0, 0, 1, 1], [], []>} : vector<16x72xf32>, vector<72x128xf32>, vector<16x128xf32> -> vector<16x128xf32>
    %25 = arith.addf %17, %24 : vector<16x128xf32>
    %c2_i32 = arith.constant 2 : i32
    %26 = arith.addi %8, %c2_i32 : i32
    %c0_17 = arith.constant 0 : index
    %27 = arith.index_cast %26 : i32 to index
    %c0_18 = arith.constant 0 : index
    %28 = vector.load %arg1[%c0_17, %27, %c0_18] : memref<1x18x72xf32, #tpu.memory_space<vmem>>, vector<1x16x72xf32>
    %29 = vector.shape_cast %28 : vector<1x16x72xf32> to vector<16x72xf32>
    %cst_19 = arith.constant 0.000000e+00 : f32
    %30 = vector.broadcast %cst_19 : f32 to vector<16x72xf32>
    %31 = arith.maximumf %29, %30 : vector<16x72xf32>
    %cst_20 = arith.constant dense<0.000000e+00> : vector<16x128xf32>
    %32 = tpu.matmul %31, %5, %cst_20 {dimension_numbers = #tpu.dot_dimension_numbers<[1], [0], [0], [1], [0, 0, 1, 1], [], []>} : vector<16x72xf32>, vector<72x128xf32>, vector<16x128xf32> -> vector<16x128xf32>
    %33 = arith.addf %25, %32 : vector<16x128xf32>
    %34 = vector.broadcast %6 : vector<1x128xf32> to vector<16x128xf32>
    %35 = arith.addf %33, %34 : vector<16x128xf32>
    %c0_21 = arith.constant 0 : index
    %36 = arith.index_cast %8 : i32 to index
    %c0_22 = arith.constant 0 : index
    %37 = vector.load %arg4[%c0_21, %36, %c0_22] : memref<1x16x128xf32, #tpu.memory_space<vmem>>, vector<1x16x128xf32>
    %38 = vector.shape_cast %37 : vector<1x16x128xf32> to vector<16x128xf32>
    %39 = vector.shape_cast %35 : vector<16x128xf32> to vector<1x16x128xf32>
    tpu.vector_store %arg4[%c0_21, %36, %c0_22], %39 {strides = array<i32>} : memref<1x16x128xf32, #tpu.memory_space<vmem>>, vector<1x16x128xf32>,
    %c1_i32_23 = arith.constant 1 : i32
    return
  }
  func.func @transform_0(%arg0: i32) -> (i32, i32, i32) {
    %c0_i32 = arith.constant 0 : i32
    %c0_i32_0 = arith.constant 0 : i32
    %c0_i32_1 = arith.constant 0 : i32
    return %arg0, %c0_i32, %c0_i32_0 : i32, i32, i32
  }
  func.func @transform_1(%arg0: i32) -> (i32, i32, i32) {
    %c0_i32 = arith.constant 0 : i32
    %c0_i32_0 = arith.constant 0 : i32
    %c0_i32_1 = arith.constant 0 : i32
    %c0_i32_2 = arith.constant 0 : i32
    return %c0_i32, %c0_i32_0, %c0_i32_1 : i32, i32, i32
  }
  func.func @transform_2(%arg0: i32) -> (i32, i32) {
    %c0_i32 = arith.constant 0 : i32
    %c0_i32_0 = arith.constant 0 : i32
    %c0_i32_1 = arith.constant 0 : i32
    return %c0_i32, %c0_i32_0 : i32, i32
  }
  func.func @transform_3(%arg0: i32) -> (i32, i32, i32) {
    %c0_i32 = arith.constant 0 : i32
    %c0_i32_0 = arith.constant 0 : i32
    %c0_i32_1 = arith.constant 0 : i32
    return %arg0, %c0_i32, %c0_i32_0 : i32, i32, i32
  }
}

</mosaic_0001>

<bundles_post_ra>
// kernel: tile.8
= control target key start
LH: loop header
LB: loop body
LE: loop exit
PB: predicated region body
PF: predicated region fallthrough
CT: control target
= control target key end

     0   :  { %s28_s0 = inlined_call_operand.vmem [shape: f32[8], index: 0, kind: input, shape index: {}]   ;;  %s29_s1 = inlined_call_operand.vmem [shape: f32[16,8], index: 1, kind: output, shape index: {}]  }
   0x1   :  { %v4_v0 = vld [vmem:[%s28_s0] ss:$0 sm:$0xff] }
   0x2   :  { %5 = vst [vmem:[%s29_s1] sm:$0xff] %v4_v0  ;;  %8 = vst [vmem:[%s29_s1 + $0x8] sm:$0xff] %v4_v0 }

// kernel: tile.9
= control target key start
LH: loop header
LB: loop body
LE: loop exit
PB: predicated region body
PF: predicated region fallthrough
CT: control target
= control target key end

     0   :  { %s131_s10 = smov 120   ;;  %s132_s11 = smov 104   ;;  %vm3_vm0 = vcmask 64512   ;;  %vm9_vm1 = vcmask 1048512   ;;  %vm15_vm2 = vcmask 982912   ;;  %vm21_vm3 = vcmask 917312   ;;  %s207_s0 = inlined_call_operand.vmem [shape: f32[16,8], index: 0, kind: input, shape index: {}]   ;;  %s208_s1 = inlined_call_operand.vmem [shape: f32[1,128], index: 1, kind: output, shape index: {}]  }
   0x1   :  { %v101_v0 = vld [vmem:[%s207_s0 + $0xf] sm:$0x1]   ;;  %v103_v1 = vld [vmem:[%s207_s0 + $0xd] sm:$0x1]   ;;  %v102_v2 = vld [vmem:[%s207_s0 + $0xe] sm:$0x1]  }
   0x2   :  { %7 = vrot.lane.b32.xlu0 %v101_v0, %s131_s10  ;;  %19 = vrot.lane.b32.xlu1 %v103_v1, %s132_s11  ;;  %v104_v3 = vld [vmem:[%s207_s0 + $0xc] sm:$0x1]   ;;  %s133_s16 = smov 112   ;;  %s134_s17 = smov 96   ;;  %v105_v4 = vld [vmem:[%s207_s0 + $0xb] sm:$0x1]  }
   0x3   :  { %v106_v5 = vld [vmem:[%s207_s0 + $0xa] sm:$0x1]   ;;  %v2_v6 = vld [vmem:[%s207_s0] sm:$0x1]   ;;  %s135_s24 = smov 88   ;;  %s136_s25 = smov 80  }
   0x4   :  { %4 = vst.msk [vmem:[#allocation0] sm:$0x1] %vm3_vm0, %v2_v6   ;;  %v107_v7 = vld [vmem:[%s207_s0 + $0x9] sm:$0x1]   ;;  %v108_v8 = vld [vmem:[%s207_s0 + $0x8] sm:$0x1]  }
   0x5   :  { %s137_s30 = smov 72   ;;  %s138_s2 = smov 64   ;;  %v109_v9 = vld [vmem:[%s207_s0 + $0x7] sm:$0x1]   ;;  %v110_v10 = vld [vmem:[%s207_s0 + $0x6] sm:$0x1]  }
   0x6   :  { %13 = vrot.lane.b32.xlu0 %v102_v2, %s133_s16  ;;  %25 = vrot.lane.b32.xlu1 %v104_v3, %s134_s17  ;;  %s139_s7 = smov 56   ;;  %s140_s8 = smov 48   ;;  %v111_v11 = vld [vmem:[%s207_s0 + $0x5] sm:$0x1]   ;;  %v112_v12 = vld [vmem:[%s207_s0 + $0x4] sm:$0x1]  }
   0x7   :  { %s141_s13 = smov 40   ;;  %s142_s14 = smov 32   ;;  %v113_v13 = vld [vmem:[%s207_s0 + $0x3] sm:$0x1]   ;;  %v114_v14 = vld [vmem:[%s207_s0 + $0x2] sm:$0x1]  }
   0x8   :  { %s143_s19 = smov 24   ;;  %s144_s20 = smov 16   ;;  %v115_v15 = vld [vmem:[%s207_s0 + $0x1] sm:$0x1]   ;;  %vm27_vm4 = vcmask 851712   ;;  %vm33_vm5 = vcmask 786112  }
   0x9   :  { %s145_s0 = smov 8   ;;  %vm39_vm6 = vcmask 720512   ;;  %vm45_vm7 = vcmask 654912   ;;  %vm51_vm8 = vcmask 589312   ;;  %vm57_vm9 = vcmask 523712  }
   0xa   :  { %31 = vrot.lane.b32.xlu0 %v105_v4, %s135_s24  ;;  %37 = vrot.lane.b32.xlu1 %v106_v5, %s136_s25  ;;  %vm63_vm10 = vcmask 458112   ;;  %vm69_vm11 = vcmask 392512   ;;  %vm75_vm12 = vcmask 326912   ;;  %vm81_vm13 = vcmask 261312  }
   0xb   :  { %vm87_vm14 = vcmask 195712   ;;  %vm93_vm15 = vcmask 130112  }
   0xe   :  { %43 = vrot.lane.b32.xlu0 %v107_v7, %s137_s30  ;;  %49 = vrot.lane.b32.xlu1 %v108_v8, %s138_s2 }
  0x12   :  { %55 = vrot.lane.b32.xlu0 %v109_v9, %s139_s7  ;;  %61 = vrot.lane.b32.xlu1 %v110_v10, %s140_s8 }
  0x16   :  { %67 = vrot.lane.b32.xlu0 %v111_v11, %s141_s13  ;;  %73 = vrot.lane.b32.xlu1 %v112_v12, %s142_s14 }
  0x1a   :  { %79 = vrot.lane.b32.xlu0 %v113_v13, %s143_s19  ;;  %85 = vrot.lane.b32.xlu1 %v114_v14, %s144_s20 }
  0x1e   :  { %91 = vrot.lane.b32.xlu0 %v115_v15, %s145_s0 }
  0x74   :  { %v8_v16 = vpop.permute.xlu0 %7   ;;  %v20_v17 = vpop.permute.xlu1 %19  }
  0x75   :  { %10 = vst.msk [vmem:[#allocation0] sm:$0x1] %vm9_vm1, %v8_v16  }
  0x78   :  { %v14_v18 = vpop.permute.xlu0 %13   ;;  %v26_v19 = vpop.permute.xlu1 %25  }
  0x79   :  { %16 = vst.msk [vmem:[#allocation0] sm:$0x1] %vm15_vm2, %v14_v18  }
  0x7a   :  { %22 = vst.msk [vmem:[#allocation0] sm:$0x1] %vm21_vm3, %v20_v17  }
  0x7b   :  { %28 = vst.msk [vmem:[#allocation0] sm:$0x1] %vm27_vm4, %v26_v19  }
  0x7c   :  { %v32_v20 = vpop.permute.xlu0 %31   ;;  %v38_v21 = vpop.permute.xlu1 %37  }
  0x7d   :  { %34 = vst.msk [vmem:[#allocation0] sm:$0x1] %vm33_vm5, %v32_v20  }
  0x7e   :  { %40 = vst.msk [vmem:[#allocation0] sm:$0x1] %vm39_vm6, %v38_v21  }
  0x80   :  { %v44_v22 = vpop.permute.xlu0 %43   ;;  %v50_v23 = vpop.permute.xlu1 %49  }
  0x81   :  { %46 = vst.msk [vmem:[#allocation0] sm:$0x1] %vm45_vm7, %v44_v22  }
  0x82   :  { %52 = vst.msk [vmem:[#allocation0] sm:$0x1] %vm51_vm8, %v50_v23  }
  0x84   :  { %v56_v24 = vpop.permute.xlu0 %55   ;;  %v62_v25 = vpop.permute.xlu1 %61  }
  0x85   :  { %58 = vst.msk [vmem:[#allocation0] sm:$0x1] %vm57_vm9, %v56_v24  }
  0x86   :  { %64 = vst.msk [vmem:[#allocation0] sm:$0x1] %vm63_vm10, %v62_v25  }
  0x88   :  { %v68_v26 = vpop.permute.xlu0 %67   ;;  %v74_v27 = vpop.permute.xlu1 %73  }
  0x89   :  { %70 = vst.msk [vmem:[#allocation0] sm:$0x1] %vm69_vm11, %v68_v26  }
  0x8a   :  { %76 = vst.msk [vmem:[#allocation0] sm:$0x1] %vm75_vm12, %v74_v27  }
  0x8c   :  { %v80_v28 = vpop.permute.xlu0 %79   ;;  %v86_v29 = vpop.permute.xlu1 %85  }
  0x8d   :  { %82 = vst.msk [vmem:[#allocation0] sm:$0x1] %vm81_vm13, %v80_v28  }
  0x8e   :  { %88 = vst.msk [vmem:[#allocation0] sm:$0x1] %vm87_vm14, %v86_v29  }
  0x90   :  { %v92_v30 = vpop.permute.xlu0 %91  }
  0x91   :  { %94 = vst.msk [vmem:[#allocation0] sm:$0x1] %vm93_vm15, %v92_v30  }
  0x98   :  { %v98_v31 = vld [vmem:[#allocation0] sm:$0x1] }
  0x99   :  { %100 = vst [vmem:[%s208_s1] sm:$0x1] %v98_v31 }

// kernel: relu_conv_bn.1
= control target key start
LH: loop header
LB: loop body
LE: loop exit
PB: predicated region body
PF: predicated region fallthrough
CT: control target
= control target key end

     0   :  { %s755_s12 = smov 0   ;;  %s874_s0 = inlined_call_operand.vmem [shape: f32[2,18,72], index: 0, kind: input, shape index: {}]   ;;  %s875_s1 = inlined_call_operand.vmem [shape: f32[3,72,128], index: 1, kind: input, shape index: {}]   ;;  %s876_s2 = inlined_call_operand.vmem [shape: f32[1,128], index: 2, kind: input, shape index: {}]   ;;  %s877_s3 = inlined_call_operand.vmem [shape: f32[2,16,128], index: 3, kind: output, shape index: {}]  }
   0x1 LB: > { %s530_s13 = sadd.s32 4294967295, %s733_s12   ;;  %p534_p0 = scmp.ge.s32.totalorder %s733_s12, 1  ;;  %s733_s12 = sphi %s755_s12, %s13_s12  }
   0x2   : > { %p137_p1 = scmp.lt.s32.totalorder %s733_s12, 3 }
   0x4   : > { %p138_p2 = pnand %p534_p0, %p137_p1 }
   0x5   : > { %v171_v0 = vld [vmem:[%s875_s1] sm:$0xff] (!%p138_p2)  ;;  %v172_v1 = vld [vmem:[%s875_s1 + $0x8] sm:$0xff] (!%p138_p2)  ;;  %v173_v2 = vld [vmem:[%s875_s1 + $0x10] sm:$0xff] (!%p138_p2)  ;;  %p161_p3 = scmp.lt.s32.totalorder (!%p138_p2), %s530_s13, 1  ;;  %vm211_vm0 = vcmask (!%p138_p2), 588800  }
   0x6   : > { %141 = sbr.rel (%p138_p2) target bundleno = 262 (0x106), region = 32  ;;  %v682_v3 = vpack.c.bf16 (!%p138_p2), %v172_v1, %v171_v0  ;;  %v174_v4 = vld [vmem:[%s875_s1 + $0x18] sm:$0xff] (!%p138_p2)  ;;  %v175_v6 = vld [vmem:[%s875_s1 + $0x20] sm:$0xff] (!%p138_p2)  ;;  %v176_v7 = vld [vmem:[%s875_s1 + $0x28] sm:$0xff] (!%p138_p2) }
   0x7   : > { %v686_v5 = vpack.c.bf16 (!%p138_p2), %v174_v4, %v173_v2  ;;  %v538_v8 = vld [vmem:[%s875_s1 + $0x48] sm:$0xff] (!%p138_p2)  ;;  %v539_v9 = vld [vmem:[%s875_s1 + $0x50] sm:$0xff] (!%p138_p2)  ;;  %v540_v11 = vld [vmem:[%s875_s1 + $0x58] sm:$0xff] (!%p138_p2)  ;;  %v690_v13 = vpack.c.bf16 (!%p138_p2), %v176_v7, %v175_v6 }
   0x8   : > { %683 = vmatprep.subr.bf16.mxu0 (!%p138_p2), %v682_v3  ;;  %v666_v10 = vpack.c.bf16 (!%p138_p2), %v539_v9, %v538_v8  ;;  %v541_v12 = vld [vmem:[%s875_s1 + $0x60] sm:$0xff] (!%p138_p2)  ;;  %v542_v15 = vld [vmem:[%s875_s1 + $0x68] sm:$0xff] (!%p138_p2)  ;;  %v177_v16 = vld [vmem:[%s875_s1 + $0x30] sm:$0xff] (!%p138_p2) }
   0x9   : > { %685 = vmatpush3.bf16.msra.mxu0 (!%p138_p2), %v682_v3  ;;  %v670_v14 = vpack.c.bf16 (!%p138_p2), %v541_v12, %v540_v11  ;;  %v178_v17 = vld [vmem:[%s875_s1 + $0x38] sm:$0xff] (!%p138_p2)  ;;  %v543_v18 = vld [vmem:[%s875_s1 + $0x70] sm:$0xff] (!%p138_p2)  ;;  %v545_v24 = vld [vmem:[%s875_s1 + $0x80] sm:$0xff] (!%p138_p2) }
   0xa   : > { %687 = vmatprep.subr.bf16.mxu0 (!%p138_p2), %v686_v5  ;;  %667 = vmatprep.subr.bf16.mxu1 (!%p138_p2), %v666_v10  ;;  %v674_v21 = vpack.c.bf16 (!%p138_p2), %v543_v18, %v542_v15  ;;  %v694_v22 = vpack.c.bf16 (!%p138_p2), %v178_v17, %v177_v16  ;;  %v544_v23 = vld [vmem:[%s875_s1 + $0x78] sm:$0xff] (!%p138_p2)  ;;  %v179_v28 = vld [vmem:[%s875_s1 + $0x40] sm:$0xff] (!%p138_p2)  ;;  %v547_v29 = vld [vmem:[%s875_s1 + $0x90] sm:$0xff] (!%p138_p2) }
   0xb   : > { %669 = vmatpush3.bf16.msra.mxu1 (!%p138_p2), %v666_v10  ;;  %v678_v27 = vpack.c.bf16 (!%p138_p2), %v545_v24, %v544_v23  ;;  %v548_v30 = vld [vmem:[%s875_s1 + $0x98] sm:$0xff] (!%p138_p2)  ;;  %v549_v33 = vld [vmem:[%s875_s1 + $0xa0] sm:$0xff] (!%p138_p2)  ;;  %v550_v34 = vld [vmem:[%s875_s1 + $0xa8] sm:$0xff] (!%p138_p2) }
   0xc   : > { %671 = vmatprep.subr.bf16.mxu1 (!%p138_p2), %v670_v14  ;;  %v698_v35 = vpack.c.bf16 (!%p138_p2), %v548_v30, %v547_v29  ;;  %v546_v37 = vld [vmem:[%s875_s1 + $0x88] sm:$0xff] (!%p138_p2)  ;;  %v702_v40 = vpack.c.bf16 (!%p138_p2), %v550_v34, %v549_v33  ;;  %v551_v41 = vld [vmem:[%s875_s1 + $0xb0] sm:$0xff] (!%p138_p2)  ;;  %v552_v42 = vld [vmem:[%s875_s1 + $0xb8] sm:$0xff] (!%p138_p2) }
   0xd   : > { %s879_s13 = smov (!%p161_p3, %s530_s13), 1  ;;  %689 = vmatpush3.bf16.msra.mxu0 %v686_v5  ;;  %v706_v44 = vpack.c.bf16 %v552_v42, %v551_v41  ;;  %v553_v45 = vld [vmem:[%s875_s1 + $0xc0] sm:$0xff]  ;;  %v554_v46 = vld [vmem:[%s875_s1 + $0xc8] sm:$0xff]  ;;  %v555_v48 = vld [vmem:[%s875_s1 + $0xd0] sm:$0xff] }
   0xe   : > { %s718_s30 = smul.u32 24, %s879_s13  ;;  %691 = vmatprep.subr.bf16.mxu0 %v690_v13  ;;  %v710_v47 = vpack.c.bf16 %v554_v46, %v553_v45  ;;  %s569_s23 = sshll.u32 %s879_s13, 4  ;;  %v566_v53 = vld [vmem:[%s876_s2] ss:$0 sm:$0xff] }
   0xf   : > { %673 = vmatpush3.bf16.msra.mxu1 %v670_v14 }
  0x10   : > { %s808_s18 = scalar_lea.vmem %s874_s0, %s718_s30  ;;  %675 = vmatprep.subr.bf16.mxu1 %v674_v21 }
  0x11   : > { %v201_v19 = vld [vmem:[%s808_s18] sm:$0xff]  ;;  %693 = vmatpush3.bf16.msra.mxu0 %v690_v13  ;;  %v202_v31 = vld [vmem:[%s808_s18 + $0x8] sm:$0xff] }
  0x12   : > { %v203_v20 = vmax.f32 %v201_v19, 0.0  ;;  %v556_v25 = vld [vmem:[%s808_s18 + $0x1] sm:$0xff]  ;;  %695 = vmatprep.subr.bf16.mxu0 %v694_v22  ;;  %v204_v36 = vmax.f32 %v202_v31, 0.0  ;;  %v557_v38 = vld [vmem:[%s808_s18 + $0x9] sm:$0xff] }
  0x13   : > { %v209_v26 = vmax.f32 %v556_v25, 0.0  ;;  %677 = vmatpush3.bf16.msra.mxu1 %v674_v21  ;;  %v562_v32 = vld [vmem:[%s808_s18 + $0x2] sm:$0xff]  ;;  %v210_v43 = vmax.f32 %v557_v38, 0.0  ;;  %v563_v49 = vld [vmem:[%s808_s18 + $0xa] sm:$0xff]  ;;  %s170_s18 = scalar_lea.vmem %s877_s3, %s569_s23 }
  0x14   : > { %642 = vmatprep.mubr.msk.f32.mxu0 %vm211_vm0, %v203_v20  ;;  %679 = vmatprep.subr.bf16.mxu1 %v678_v27  ;;  %v378_v39 = vmax.f32 %v562_v32, 0.0  ;;  %v379_v50 = vmax.f32 %v563_v49, 0.0 }
  0x15   : > { %621 = vmatprep.mubr.msk.f32.mxu1 %vm211_vm0, %v209_v26  ;;  %697 = vmatpush3.bf16.msra.mxu0 %v694_v22 }
  0x16   : > { %640 = vmatprep.subr.mxu0 %v179_v28 }
  0x17   : > { %681 = vmatpush3.bf16.msra.mxu1 %v678_v27 }
  0x18   : > { %619 = vmatprep.subr.mxu1 %v546_v37 }
  0x19   : > { %641 = vmatpush3.msra.mxu0 %v179_v28 }
  0x1a   : > { %699 = vmatprep.subr.bf16.mxu0 %v698_v35  ;;  %643 = vmatmul.mubr.msk.f32.vlgmr.msra.gmra.mrb[0].mxu0 %vm211_vm0, %v204_v36 }
  0x1b   : > { %701 = vmatpush3.bf16.msra.mxu0 %v698_v35  ;;  %663 = vmatprep.mubr.msk.f32.mxu0 %vm211_vm0, %v378_v39 }
  0x1c   : > { %703 = vmatprep.subr.bf16.mxu0 %v702_v40  ;;  %620 = vmatpush3.msra.mxu1 %v546_v37 }
  0x1d   : > { %622 = vmatmul.mubr.msk.f32.vlgmr.msra.gmra.mrb[0].mxu1 %vm211_vm0, %v210_v43 }
  0x1f   : > { %705 = vmatpush3.bf16.msra.mxu0 %v702_v40 }
  0x20   : > { %707 = vmatprep.subr.bf16.mxu0 %v706_v44 }
  0x23   : > { %709 = vmatpush3.bf16.msra.mxu0 %v706_v44 }
  0x24   : > { %711 = vmatprep.subr.bf16.mxu0 %v710_v47 }
  0x27   : > { %713 = vmatpush3.bf16.msra.mxu0 %v710_v47 }
  0x28   : > { %661 = vmatprep.subr.mxu0 %v555_v48 }
  0x2b   : > { %662 = vmatpush3.msra.mxu0 %v555_v48 }
  0x2c   : > { %664 = vmatmul.mubr.msk.f32.vlgmr.msra.gmra.mrb[0].mxu0 %vm211_vm0, %v379_v50 }
  0xf0   : > { %v623_v51 = vpop.f32.mrb[0].mxu1 }
  0xf1   : > { %v284_v52 = vpop.f32.mrb[1].mxu1 }
  0xff   : > { %v665_v54 = vpop.f32.mrb[0].mxu0 }
 0x100   : > { %v714_v55 = vadd.f32 %v665_v54, %v623_v51  ;;  %v452_v56 = vpop.f32.mrb[1].mxu0 }
 0x101   : > { %v715_v57 = vadd.f32 %v452_v56, %v284_v52 }
 0x102   : > { %v470_v58 = vadd.f32 %v714_v55, %v566_v53 }
 0x103   : > { %v469_v59 = vadd.f32 %v715_v57, %v566_v53 }
 0x104   : > { %472 = vst [vmem:[%s170_s18 + $0x8] sm:$0xff] %v470_v58 }
 0x105   : > { %471 = vst [vmem:[%s170_s18] sm:$0xff] %v469_v59 }
 0x106 PF: > { %s13_s12 = sadd.s32 1, %s733_s12  }
 0x107   : > { %p10_p4 = scmp.ge.s32.totalorder %s13_s12, 4  }
 0x109   :  { %12 = sbr.rel (!%p10_p4) target bundleno = 1 (0x1), region = 66 }

</bundles_post_ra>
